<compile_context>
chip_gen: v7x
topology: tpu7x:2x2x1
jax: 0.10.0
libtpu: 0.0.40
codegen_flags: <defaults>
</compile_context>

<pallas_src>
import functools

import jax
import jax.numpy as jnp
from jax.experimental import pallas as pl
from jax.experimental.pallas import tpu as pltpu


def _interaction_kernel(acted_ref, action_ref, noise_ref,
                        acted_out_ref, action_out_ref,
                        res_acted_ref, res_action_ref,
                        *, step: float, reduce_all: bool):
    """All refs share the same (rows, cols) block shape.

    reduce_all=False: each row is an independent vector (batched path).
    reduce_all=True : the whole block is ONE logical vector laid out as
                      (8, size//8); L2 norms reduce over the full block.
    """
    acted = acted_ref[...]
    action = action_ref[...]
    noise = noise_ref[...]

    # elementwise non-linearities (VPU / EUP)
    gate = jnp.tanh(action) + jax.nn.sigmoid(acted)

    prod = acted * action + noise
    an = acted + noise

    # L2 norms: lane reduce (+ sublane reduce for the single-vector layout)
    def _l2(x):
        ss = jnp.sum(x * x, axis=-1, keepdims=True)
        if reduce_all:
            ss = jnp.sum(ss, axis=0, keepdims=True)
        return jnp.sqrt(ss)

    norm = _l2(prod)
    # TODO(synk): PyTorch substitutes mean(self.norm_hist) when norm is
    # NaN/inf; that stateful Python-side history is not reproduced here.
    denom = _l2(an) + jnp.float32(1.0)

    ng = norm * gate
    res_acted = acted + ng
    res_action = action + ng

    step_f = jnp.float32(step)
    # direct divide matches the PyTorch reference rounding exactly
    acted_out_ref[...] = (acted + step_f * res_acted) / denom
    action_out_ref[...] = (action + step_f * res_action) / denom
    res_acted_ref[...] = res_acted
    res_action_ref[...] = res_action


def _pallas_forward_batched(acted, action, noise, *, step, batch_tile):
    """acted/action/noise: (B, size) float32 -> 4 x (B, size) float32."""
    B, size = acted.shape
    grid = (B // batch_tile,)

    kernel = functools.partial(_interaction_kernel, step=float(step),
                               reduce_all=False)

    def idx(i):
        return (i, 0)

    spec = pl.BlockSpec((batch_tile, size), idx)
    out_sds = jax.ShapeDtypeStruct((B, size), jnp.float32)

    # VMEM budget: (3 in + 4 out) tiles double-buffered plus ~6 full-tile
    # elementwise temporaries, plus fixed headroom; capped at 48 MiB so a tile
    # tuned on v5e/v6e (128 MiB VMEM) never asks for all of v7x's 64 MiB/TC.
    tile_bytes = batch_tile * size * 4
    vmem_limit = int(min(max((2 * 7 + 6) * tile_bytes + (4 << 20), 16 << 20),
                         48 << 20))

    outs = pl.pallas_call(
        kernel,
        out_shape=(out_sds, out_sds, out_sds, out_sds),
        grid=grid,
        in_specs=[spec, spec, spec],
        out_specs=(spec, spec, spec, spec),
        compiler_params=pltpu.CompilerParams(
            dimension_semantics=("parallel",),   # shards tiles across TCs
            vmem_limit_bytes=vmem_limit),
    )(acted, action, noise)
    return tuple(outs)


@functools.partial(jax.jit, static_argnames=("step",))
def _pallas_forward_single(acted, action, noise, *, step):
    """acted/action/noise: (size,) float32; L2 norms over the whole vector."""
    size = acted.shape[0]
    rows, cols = (8, size // 8) if size % 8 == 0 else (1, size)

    kernel = functools.partial(_interaction_kernel, step=float(step),
                               reduce_all=True)
    out_sds = jax.ShapeDtypeStruct((rows, cols), jnp.float32)

    outs = pl.pallas_call(
        kernel,
        out_shape=(out_sds, out_sds, out_sds, out_sds),
        compiler_params=pltpu.CompilerParams(vmem_limit_bytes=16 << 20),
    )(acted.reshape(rows, cols), action.reshape(rows, cols),
      noise.reshape(rows, cols))
    return tuple(o.reshape(size) for o in outs)


@functools.partial(jax.jit,
                   static_argnames=("step", "batch_tile", "return_noise"))
def static_interaction_forward_batched(acted, action, *, noise_scale=0.01,
                                       step=0.1, seed=0, noise=None,
                                       batch_tile=None, return_noise=False):
    """Batched StaticInteractionModel.forward: acted/action are (B, size)."""
    acted = jnp.asarray(acted, jnp.float32)
    action = jnp.asarray(action, jnp.float32)
    B, size = acted.shape
    assert action.shape == (B, size)

    if noise is None:
        key = jax.random.PRNGKey(seed)
        noise = (jax.random.uniform(key, (B, size), dtype=jnp.float32)
                 * jnp.asarray(noise_scale, jnp.float32))
        # TODO(synk): distribution-equivalent to torch.rand, not bit-identical.
    else:
        noise = jnp.asarray(noise, jnp.float32)

    if batch_tile is None:
        if B <= 256:
            batch_tile = B          # single tile; block == full array is legal
        else:
            # largest multiple-of-8 divisor <= 256 leaving >= 2 grid steps
            batch_tile = next((t for t in range(256, 7, -8)
                               if B % t == 0 and B // t >= 2), B)
    assert B % batch_tile == 0
    assert batch_tile == B or batch_tile % 8 == 0, (
        "batch_tile must be a multiple of 8 (TPU sublane) or equal to B")

    outs = _pallas_forward_batched(acted, action, noise,
                                   step=float(step), batch_tile=batch_tile)
    if return_noise:
        return outs + (noise,)
    return outs


def static_interaction_forward(acted, action, noise_scale=0.01, *, step=0.1,
                               size=1024, seed=0, noise=None,
                               return_noise=False):
    """Module-faithful single-vector forward. acted/action: float32 [size]."""
    acted = jnp.asarray(acted, jnp.float32)
    action = jnp.asarray(action, jnp.float32)
    assert acted.shape == (size,) and action.shape == (size,)

    if noise is None:
        key = jax.random.PRNGKey(seed)
        noise = (jax.random.uniform(key, (size,), dtype=jnp.float32)
                 * jnp.asarray(noise_scale, jnp.float32))
    else:
        noise = jnp.asarray(noise, jnp.float32)

    outs = _pallas_forward_single(acted, action, noise, step=float(step))
    if return_noise:
        return outs + (noise,)
    return outs


def _reference_forward(acted, action, noise, step=0.1):
    """Pure-JAX reference (same noise realization as the kernel)."""
    sig = jax.nn.sigmoid(acted)
    th = jnp.tanh(action)
    norm = jnp.linalg.norm(acted * action + noise)
    gate = th + sig
    res_acted = acted + norm * gate
    res_action = action + norm * gate
    denom = jnp.linalg.norm(acted + noise) + 1.0
    acted_out = (acted + step * res_acted) / denom
    action_out = (action + step * res_action) / denom
    return acted_out, action_out, res_acted, res_action


if __name__ == "__main__":
    SIZE = 1024
    STEP = 0.1
    NOISE = 0.01

    root = jax.random.PRNGKey(0)
    k_acted, k_action, k_b1, k_b2 = jax.random.split(root, 4)

    # ---- single-vector path (module semantics) ---------------------------
    acted = jax.random.normal(k_acted, (SIZE,), dtype=jnp.float32)
    action = jax.random.normal(k_action, (SIZE,), dtype=jnp.float32)

    outs = static_interaction_forward(acted, action, NOISE, step=STEP,
                                      size=SIZE, seed=0, return_noise=True)
    outs = jax.block_until_ready(outs)
    acted_out, action_out, res_acted, res_action, noise_v = outs

    refs = _reference_forward(acted, action, noise_v, step=STEP)
    for o, r in zip((acted_out, action_out, res_acted, res_action), refs):
        assert jnp.allclose(o, r, atol=1e-5, rtol=1e-5), "mismatch vs reference"

    # ---- batched path (amortizes per-call overhead) -----------------------
    B = 8
    ab = jax.random.normal(k_b1, (B, SIZE), dtype=jnp.float32)
    bb = jax.random.normal(k_b2, (B, SIZE), dtype=jnp.float32)
    bouts = static_interaction_forward_batched(
        ab, bb, noise_scale=NOISE, step=STEP, seed=7, return_noise=True)
    bouts = jax.block_until_ready(bouts)
    b_ao, b_bo, b_ra, b_rb, b_noise = bouts

    brefs = jax.vmap(lambda a, b, n: _reference_forward(a, b, n, step=STEP))(
        ab, bb, b_noise)
    for o, r in zip((b_ao, b_bo, b_ra, b_rb), brefs):
        assert jnp.allclose(o, r, atol=1e-5, rtol=1e-5), "batched mismatch"

    print("KERNEL_OK")
</pallas_src>

<mosaic_0001>
module attributes {stable_mosaic.version = 11 : i64} {
  func.func @_interaction_kernel(%arg0: memref<8x128xf32, #tpu.memory_space<vmem>>, %arg1: memref<8x128xf32, #tpu.memory_space<vmem>>, %arg2: memref<8x128xf32, #tpu.memory_space<vmem>>, %arg3: memref<8x128xf32, #tpu.memory_space<vmem>>, %arg4: memref<8x128xf32, #tpu.memory_space<vmem>>, %arg5: memref<8x128xf32, #tpu.memory_space<vmem>>, %arg6: memref<8x128xf32, #tpu.memory_space<vmem>>) attributes {dimension_semantics = [], scalar_prefetch = 0 : i64, scratch_operands = 0 : i64, tpu.core_type = #tpu.core_type<tc>} {
    %c0 = arith.constant 0 : index
    %c0_0 = arith.constant 0 : index
    %0 = vector.load %arg0[%c0, %c0_0] : memref<8x128xf32, #tpu.memory_space<vmem>>, vector<8x128xf32>
    %c0_1 = arith.constant 0 : index
    %c0_2 = arith.constant 0 : index
    %1 = vector.load %arg1[%c0_1, %c0_2] : memref<8x128xf32, #tpu.memory_space<vmem>>, vector<8x128xf32>
    %c0_3 = arith.constant 0 : index
    %c0_4 = arith.constant 0 : index
    %2 = vector.load %arg2[%c0_3, %c0_4] : memref<8x128xf32, #tpu.memory_space<vmem>>, vector<8x128xf32>
    %3 = math.tanh %1 : vector<8x128xf32>
    %4 = arith.negf %0 : vector<8x128xf32>
    %5 = math.exp %4 : vector<8x128xf32>
    %cst = arith.constant 1.000000e+00 : f32
    %6 = vector.broadcast %cst : f32 to vector<8x128xf32>
    %7 = arith.addf %6, %5 : vector<8x128xf32>
    %8 = arith.divf %6, %7 : vector<8x128xf32>
    %9 = arith.addf %3, %8 : vector<8x128xf32>
    %10 = arith.mulf %0, %1 : vector<8x128xf32>
    %11 = arith.addf %10, %2 : vector<8x128xf32>
    %12 = arith.addf %0, %2 : vector<8x128xf32>
    %13 = arith.mulf %11, %11 : vector<8x128xf32>
    %cst_5 = arith.constant dense<0.000000e+00> : vector<8xf32>
    %14 = vector.multi_reduction <add>, %13, %cst_5 [1] : vector<8x128xf32> to vector<8xf32>
    %15 = vector.shape_cast %14 : vector<8xf32> to vector<8x1xf32>
    %cst_6 = arith.constant dense<0.000000e+00> : vector<1xf32>
    %16 = vector.multi_reduction <add>, %15, %cst_6 [0] : vector<8x1xf32> to vector<1xf32>
    %17 = vector.shape_cast %16 : vector<1xf32> to vector<1x1xf32>
    %18 = math.sqrt %17 : vector<1x1xf32>
    %19 = arith.mulf %12, %12 : vector<8x128xf32>
    %cst_7 = arith.constant dense<0.000000e+00> : vector<8xf32>
    %20 = vector.multi_reduction <add>, %19, %cst_7 [1] : vector<8x128xf32> to vector<8xf32>
    %21 = vector.shape_cast %20 : vector<8xf32> to vector<8x1xf32>
    %cst_8 = arith.constant dense<0.000000e+00> : vector<1xf32>
    %22 = vector.multi_reduction <add>, %21, %cst_8 [0] : vector<8x1xf32> to vector<1xf32>
    %23 = vector.shape_cast %22 : vector<1xf32> to vector<1x1xf32>
    %24 = math.sqrt %23 : vector<1x1xf32>
    %cst_9 = arith.constant 1.000000e+00 : f32
    %25 = vector.broadcast %cst_9 : f32 to vector<1x1xf32>
    %26 = arith.addf %24, %25 : vector<1x1xf32>
    %27 = vector.broadcast %18 : vector<1x1xf32> to vector<8x128xf32>
    %28 = arith.mulf %27, %9 : vector<8x128xf32>
    %29 = arith.addf %0, %28 : vector<8x128xf32>
    %30 = arith.addf %1, %28 : vector<8x128xf32>
    %cst_10 = arith.constant 1.000000e-01 : f32
    %31 = vector.broadcast %cst_10 : f32 to vector<8x128xf32>
    %32 = arith.mulf %31, %29 : vector<8x128xf32>
    %33 = arith.addf %0, %32 : vector<8x128xf32>
    %34 = vector.broadcast %26 : vector<1x1xf32> to vector<8x128xf32>
    %35 = arith.divf %33, %34 : vector<8x128xf32>
    %c0_11 = arith.constant 0 : index
    %c0_12 = arith.constant 0 : index
    %36 = vector.load %arg3[%c0_11, %c0_12] : memref<8x128xf32, #tpu.memory_space<vmem>>, vector<8x128xf32>
    tpu.vector_store %arg3[%c0_11, %c0_12], %35 {strides = array<i32>} : memref<8x128xf32, #tpu.memory_space<vmem>>, vector<8x128xf32>,
    %cst_13 = arith.constant 1.000000e-01 : f32
    %37 = vector.broadcast %cst_13 : f32 to vector<8x128xf32>
    %38 = arith.mulf %37, %30 : vector<8x128xf32>
    %39 = arith.addf %1, %38 : vector<8x128xf32>
    %40 = vector.broadcast %26 : vector<1x1xf32> to vector<8x128xf32>
    %41 = arith.divf %39, %40 : vector<8x128xf32>
    %c0_14 = arith.constant 0 : index
    %c0_15 = arith.constant 0 : index
    %42 = vector.load %arg4[%c0_14, %c0_15] : memref<8x128xf32, #tpu.memory_space<vmem>>, vector<8x128xf32>
    tpu.vector_store %arg4[%c0_14, %c0_15], %41 {strides = array<i32>} : memref<8x128xf32, #tpu.memory_space<vmem>>, vector<8x128xf32>,
    %c0_16 = arith.constant 0 : index
    %c0_17 = arith.constant 0 : index
    %43 = vector.load %arg5[%c0_16, %c0_17] : memref<8x128xf32, #tpu.memory_space<vmem>>, vector<8x128xf32>
    tpu.vector_store %arg5[%c0_16, %c0_17], %29 {strides = array<i32>} : memref<8x128xf32, #tpu.memory_space<vmem>>, vector<8x128xf32>,
    %c0_18 = arith.constant 0 : index
    %c0_19 = arith.constant 0 : index
    %44 = vector.load %arg6[%c0_18, %c0_19] : memref<8x128xf32, #tpu.memory_space<vmem>>, vector<8x128xf32>
    tpu.vector_store %arg6[%c0_18, %c0_19], %30 {strides = array<i32>} : memref<8x128xf32, #tpu.memory_space<vmem>>, vector<8x128xf32>,
    return
  }
}

</mosaic_0001>

<bundles_post_ra>
// kernel: _pallas_forward_single.1
= control target key start
LH: loop header
LB: loop body
LE: loop exit
PB: predicated region body
PF: predicated region fallthrough
CT: control target
= control target key end

     0   :  { %12 = vsyncpa [#allocation3], 0  ;;  %s419_s0 = inlined_call_operand.vmem [shape: f32[8,128], index: 0, kind: input, shape index: {}]   ;;  %s420_s1 = inlined_call_operand.hbm [shape: f32[8,128], index: 1, kind: input, shape index: {}]   ;;  %s421_s2 = inlined_call_operand.vmem [shape: f32[8,128], index: 2, kind: input, shape index: {}]   ;;  %s422_s3 = inlined_call_operand.hbm [shape: f32[8,128], index: 3, kind: output, shape index: {0}]   ;;  %s423_s4 = inlined_call_operand.hbm [shape: f32[8,128], index: 4, kind: output, shape index: {1}]   ;;  %s424_s5 = inlined_call_operand.hbm [shape: f32[8,128], index: 5, kind: output, shape index: {2}]   ;;  %s425_s6 = inlined_call_operand.hbm [shape: f32[8,128], index: 6, kind: output, shape index: {3}]  }
   0x1   :  { %13 = vsyncpa [#allocation4], 0 }
   0x2   :  { %14 = vsyncpa [#allocation7], 0 }
   0x3   :  { %15 = vsyncpa [#allocation10], 0  ;;  %s286_s21 = smov [#allocation2]   ;;  %s168_s25 = scalar_lea.hbm %s420_s1, 128 }
   0x4   :  { %s24_s22 = sshll.u32 %s286_s21, 4  ;;  %p169_p0 = scmp.ne.s32.totalorder %s420_s1, %s168_s25  ;;  %s25_s22 = int_to_ptr.vmem [resolvable:$true] %s24_s22 }
   0x5   :  { %p172_p1 = scmp.lt.u32.totalorder %s168_s25, %s420_s1 }
   0x7   :  { %p174_p2 = pnand %p172_p1, %p169_p0 }
   0x9   :  { %177 = shalt.err (!%p174_p2)
}
   0xa   :  { %s178_s30 = scalar_lea.vmem %s25_s22, 128  ;;  %p183_p4 = scmp.lt.s32.totalorder %s25_s22, %s25_s22 }
   0xb   :  { %p179_p3 = scmp.ne.s32.totalorder %s25_s22, %s178_s30  ;;  %p184_p5 = scmp.lt.s32.totalorder %s178_s30, %s178_s30 }
   0xd   :  { %p185_p6 = por %p184_p5, %p183_p4 }
   0xf   :  { %p186_p7 = pnand %p185_p6, %p179_p3 }
  0x11   :  { %189 = shalt.err (!%p186_p7)
}
  0x12   :  { %27 = dma.hbm_to_vmem [thread:$0]  %s420_s1, 128, %s25_s22, [#allocation3]  }
  0x13   :  { %278 = dma.done.wait [#allocation3], 128  }
  0x14   :  { %279 = vsyncadd [#allocation3], 4294967168  ;;  %v341_v0 = vld [vmem:[%s419_s0] sm:$0xff]  ;;  %s287_s0 = smov [#allocation9]  }
  0x15   :  { %v35_v1 = vld [vmem:[%s421_s2] sm:$0xff]  ;;  %v150_v8 = vmul.f32 -1.442695, %v341_v0  ;;  %s130_s1 = sshll.u32 %s287_s0, 4  ;;  %s131_s1 = int_to_ptr.vmem [resolvable:$true] %s130_s1 }
  0x16   :  { %v346_v2 = vld [vmem:[#allocation2] sm:$0xff]  ;;  %v46_v3 = vadd.f32 %v35_v1, %v341_v0  ;;  %s190_s2 = scalar_lea.vmem %s131_s1, 128  ;;  %p195_p9 = scmp.lt.s32.totalorder %s131_s1, %s131_s1 }
  0x17   :  { %v44_v4 = vmul.f32 %v346_v2, %v341_v0  ;;  %156 = vpow2.f32 %v150_v8  ;;  %p191_p8 = scmp.ne.s32.totalorder %s131_s1, %s190_s2  ;;  %p196_p10 = scmp.lt.s32.totalorder %s190_s2, %s190_s2 }
  0x18   :  { %v63_v5 = vmul.f32 %v46_v3, %v46_v3 }
  0x19   :  { %v45_v6 = vadd.f32 %v44_v4, %v35_v1  ;;  %p197_p11 = por %p196_p10, %p195_p9 }
  0x1a   :  { %64 = vadd.xlane.f32.xlu0 %v63_v5 }
  0x1b   :  { %v47_v7 = vmul.f32 %v45_v6, %v45_v6  ;;  %p198_p12 = pnand %p197_p11, %p191_p8 }
  0x1e   :  { %48 = vadd.xlane.f32.xlu0 %v47_v7 }
  0x21   :  { %v157_v17 = vpop.eup %156 }
  0x22   :  { %v40_v20 = vadd.f32 1.0, %v157_v17 }
  0xa7   :  { %v65_v9 = vpop.xlane.xlu0 %64 }
  0xa8   :  { %v66_v10 = vrot.slane %v65_v9, 4 }
  0xaa   :  { %v67_v11 = vadd.f32 %v66_v10, %v65_v9 }
  0xab   :  { %v49_v12 = vpop.xlane.xlu0 %48 }
  0xac   :  { %v68_v13 = vrot.slane %v67_v11, 2  ;;  %v50_v14 = vrot.slane %v49_v12, 4 }
  0xae   :  { %v69_v15 = vadd.f32 %v68_v13, %v67_v11  ;;  %v51_v16 = vadd.f32 %v50_v14, %v49_v12 }
  0xb0   :  { %v70_v18 = vrot.slane %v69_v15, 1  ;;  %v52_v19 = vrot.slane %v51_v16, 2 }
  0xb2   :  { %v71_v21 = vadd.f32 %v70_v18, %v69_v15  ;;  %v53_v22 = vadd.f32 %v52_v19, %v51_v16 }
  0xb4   :  { %158 = vrsqrt.f32 %v71_v21  ;;  %v54_v23 = vrot.slane %v53_v22, 1  ;;  %vm74_vm0 = vcmp.eq.f32.partialorder %v71_v21, inf  ;;  %v77_v29 = vand.u32 2147483648, %v71_v21 }
  0xb5   :  { %160 = vtanh.f32 %v346_v2  ;;  %vm76_vm1 = vcmp.eq.f32.partialorder %v71_v21, 0.0 }
  0xb6   :  { %162 = vrcp.f32 %v40_v20  ;;  %v55_v24 = vadd.f32 %v54_v23, %v53_v22 }
  0xb8   :  { %164 = vrsqrt.f32 %v55_v24  ;;  %vm58_vm2 = vcmp.eq.f32.partialorder %v55_v24, inf  ;;  %v61_v36 = vand.u32 2147483648, %v55_v24  ;;  %vm60_vm3 = vcmp.eq.f32.partialorder %v55_v24, 0.0 }
  0xbe   :  { %v159_v25 = vpop.eup %158 }
  0xbf   :  { %v161_v26 = vpop.eup %160  ;;  %v73_v27 = vmul.f32 %v159_v25, %v71_v21 }
  0xc0   :  { %v163_v28 = vpop.eup %162 }
  0xc1   :  { %v75_v30 = vsel %vm74_vm0, %v71_v21, %v73_v27  ;;  %v43_v33 = vadd.f32 %v163_v28, %v161_v26 }
  0xc2   :  { %v165_v31 = vpop.eup %164  ;;  %v78_v32 = vsel %vm76_vm1, %v77_v29, %v75_v30 }
  0xc3   :  { %v57_v34 = vmul.f32 %v165_v31, %v55_v24  ;;  %v79_v35 = vadd.f32 1.0, %v78_v32 }
  0xc5   :  { %v59_v37 = vsel %vm58_vm2, %v55_v24, %v57_v34  ;;  %166 = vrcp.f32 %v79_v35 }
  0xc6   :  { %v62_v38 = vsel %vm60_vm3, %v61_v36, %v59_v37 }
  0xc7   :  { %v80_v39 = vmul.f32 %v62_v38, %v43_v33 }
  0xc9   :  { %v82_v40 = vadd.f32 %v80_v39, %v346_v2  ;;  %v81_v41 = vadd.f32 %v80_v39, %v341_v0 }
  0xcb   :  { %v88_v42 = vmul.f32 0.1, %v82_v40  ;;  %93 = vst [vmem:[#allocation9] sm:$0xff] %v82_v40  ;;  %v83_v43 = vmul.f32 0.1, %v81_v41  ;;  %92 = vst [vmem:[#allocation8] sm:$0xff] %v81_v41 }
  0xcc   :  { %201 = shalt.err (!%p198_p12)
}
  0xcd   :  { %s202_s15 = scalar_lea.hbm %s425_s6, 128 }
  0xce   :  { %p203_p13 = scmp.ne.s32.totalorder %s425_s6, %s202_s15  ;;  %p206_p0 = scmp.lt.u32.totalorder %s202_s15, %s425_s6 }
  0xd0   :  { %p208_p1 = pnand %p206_p0, %p203_p13 }
  0xd2   :  { %211 = shalt.err (!%p208_p1)
}
  0xd3   :  { %133 = dma.vmem_to_hbm [thread:$0]  %s131_s1, 128, %s425_s6, [#allocation10]   ;;  %v89_v44 = vadd.f32 %v88_v42, %v346_v2  ;;  %v84_v45 = vadd.f32 %v83_v43, %v341_v0  ;;  %v167_v46 = vpop.eup %166 }
  0xd4   :  { %s288_s22 = smov [#allocation6]   ;;  %s289_s24 = smov [#allocation5]  }
  0xd5   :  { %s110_s23 = sshll.u32 %s288_s22, 4  ;;  %s100_s25 = sshll.u32 %s289_s24, 4  ;;  %v90_v47 = vmul.f32 %v167_v46, %v89_v44  ;;  %v86_v48 = vmul.f32 %v167_v46, %v84_v45  ;;  %s111_s23 = int_to_ptr.vmem [resolvable:$true] %s110_s23  ;;  %s369_s25 = int_to_ptr.vmem [resolvable:$true] %s100_s25 }
  0xd6   :  { %s290_s26 = smov [#allocation8]   ;;  %s212_s6 = scalar_lea.vmem %s111_s23, 128 }
  0xd7   :  { %s120_s27 = sshll.u32 %s290_s26, 4  ;;  %91 = vst [vmem:[#allocation6] sm:$0xff] %v90_v47  ;;  %87 = vst [vmem:[#allocation5] sm:$0xff] %v86_v48  ;;  %p213_p2 = scmp.ne.s32.totalorder %s111_s23, %s212_s6  ;;  %s371_s27 = int_to_ptr.vmem [resolvable:$true] %s120_s27 }
  0xd8   :  { %p217_p3 = scmp.lt.s32.totalorder %s111_s23, %s111_s23  ;;  %p218_p4 = scmp.lt.s32.totalorder %s212_s6, %s212_s6 }
  0xda   :  { %p219_p5 = por %p218_p4, %p217_p3 }
  0xdc   :  { %p220_p6 = pnand %p219_p5, %p213_p2 }
  0xde   :  { %223 = shalt.err (!%p220_p6)
}
  0xdf   :  { %s224_s30 = scalar_lea.hbm %s423_s4, 128 }
  0xe0   :  { %p225_p7 = scmp.ne.s32.totalorder %s423_s4, %s224_s30  ;;  %p228_p8 = scmp.lt.u32.totalorder %s224_s30, %s423_s4 }
  0xe2   :  { %p230_p9 = pnand %p228_p8, %p225_p7 }
  0xe4   :  { %233 = shalt.err (!%p230_p9)
}
  0xe5   :  { %113 = dma.vmem_to_hbm [thread:$0]  %s111_s23, 128, %s423_s4, [#allocation7]  }
  0xe6   :  { %s234_s0 = scalar_lea.vmem %s369_s25, 128  ;;  %p239_p11 = scmp.lt.s32.totalorder %s369_s25, %s369_s25 }
  0xe7   :  { %p235_p10 = scmp.ne.s32.totalorder %s369_s25, %s234_s0  ;;  %p240_p12 = scmp.lt.s32.totalorder %s234_s0, %s234_s0 }
  0xe9   :  { %p241_p13 = por %p240_p12, %p239_p11 }
  0xeb   :  { %p242_p0 = pnand %p241_p13, %p235_p10 }
  0xed   :  { %245 = shalt.err (!%p242_p0)
}
  0xee   :  { %s246_s13 = scalar_lea.hbm %s422_s3, 128 }
  0xef   :  { %p247_p1 = scmp.ne.s32.totalorder %s422_s3, %s246_s13  ;;  %p250_p2 = scmp.lt.u32.totalorder %s246_s13, %s422_s3 }
  0xf1   :  { %p252_p3 = pnand %p250_p2, %p247_p1 }
  0xf3   :  { %255 = shalt.err (!%p252_p3)
}
  0xf4   :  { %103 = dma.vmem_to_hbm [thread:$0]  %s369_s25, 128, %s422_s3, [#allocation4]  }
  0xf5   :  { %s256_s19 = scalar_lea.vmem %s371_s27, 128  ;;  %p261_p5 = scmp.lt.s32.totalorder %s371_s27, %s371_s27 }
  0xf6   :  { %p257_p4 = scmp.ne.s32.totalorder %s371_s27, %s256_s19  ;;  %p262_p6 = scmp.lt.s32.totalorder %s256_s19, %s256_s19 }
  0xf8   :  { %p263_p7 = por %p262_p6, %p261_p5 }
  0xfa   :  { %p264_p8 = pnand %p263_p7, %p257_p4 }
  0xfc   :  { %267 = shalt.err (!%p264_p8)
}
  0xfd   :  { %s268_s22 = scalar_lea.hbm %s424_s5, 128 }
  0xfe   :  { %p269_p9 = scmp.ne.s32.totalorder %s424_s5, %s268_s22  ;;  %p272_p10 = scmp.lt.u32.totalorder %s268_s22, %s424_s5 }
 0x100   :  { %p274_p11 = pnand %p272_p10, %p269_p9 }
 0x102   :  { %277 = shalt.err (!%p274_p11)
}
 0x103   :  { %123 = dma.vmem_to_hbm [thread:$0]  %s371_s27, 128, %s424_s5, [#allocation7]  }
 0x104   :  { %280 = dma.done.wait [#allocation4], 128  }
 0x105   :  { %281 = vsyncadd [#allocation4], 4294967168 }
 0x106   :  { %282 = dma.done.wait [#allocation7], 256  }
 0x107   :  { %283 = vsyncadd [#allocation7], 4294967040 }
 0x108   :  { %284 = dma.done.wait [#allocation10], 128  }
 0x109   :  { %285 = vsyncadd [#allocation10], 4294967168 }
 0x10a   :  { %146 = vsyncpa [#allocation3], 1 }
 0x10b   :  { %147 = vsyncpa [#allocation4], 1 }
 0x10c   :  { %148 = vsyncpa [#allocation7], 1 }
 0x10d   :  { %149 = vsyncpa [#allocation10], 1 }

</bundles_post_ra>
